<compile_context>
chip_gen: v7x
topology: tpu7x:2x2x1
jax: 0.10.0
libtpu: 0.0.40
codegen_flags: <defaults>
</compile_context>

<pallas_src>
import functools

import jax
import jax.numpy as jnp
from jax.experimental import pallas as pl
from jax.experimental.pallas import tpu as pltpu


def _ls_loss_kernel(x_ref, t_ref, lp_ref, *, epsilon, ignore_idx, seq_len, vocab,
                    use_mxu_sum):
    j = pl.program_id(1)

    xr = x_ref[0]                                   # (V, TT)  native dtype, vocab on sublanes
    t = t_ref[0]                                    # (1, TT)  int32 targets
    tt = t.shape[1]

    # token validity: inside the real sequence (tail-tile mask) and not ignore_index
    col = j * tt + jax.lax.broadcasted_iota(jnp.int32, t.shape, 1)
    valid = (col < seq_len) & (t != ignore_idx)                           # (1, TT)

    # numerically-stable log-softmax normalizer, reduced over the vocab (sublane) axis.
    # casts are kept inside the reductions so Mosaic never materializes an f32 tile copy.
    m = jnp.max(xr, axis=0, keepdims=True).astype(jnp.float32)           # (1, TT)
    lse = jnp.log(jnp.sum(jnp.exp(xr.astype(jnp.float32) - m),
                          axis=0, keepdims=True))                        # (1, TT)
    mpl = m + lse                                                        # log-normalizer

    # sum_j x_j over the vocab axis
    if use_mxu_sum:
        # bf16 path: exact f32-accumulated MXU matmul -> this pass leaves the VALU slots
        ones = jnp.ones((8, vocab), xr.dtype)
        sum_x = jnp.dot(ones, xr, preferred_element_type=jnp.float32)[0:1]   # (1, TT)
    else:
        sum_x = jnp.sum(xr.astype(jnp.float32), axis=0, keepdims=True)       # (1, TT)

    # x at the target class via sublane-iota select (no one-hot / logp temporaries)
    vrow = jax.lax.broadcasted_iota(jnp.int32, xr.shape, 0)              # (V, TT)
    x_t = jnp.sum(jnp.where(vrow == t, xr, jnp.zeros((), xr.dtype)).astype(jnp.float32),
                  axis=0, keepdims=True)                                 # (1, TT)
    in_range = (t >= 0) & (t < vocab)
    tgt_logp = jnp.where(in_range, x_t - mpl, 0.0)                       # 0 if no one-hot hit

    # sum_j logp_j = sum_j x_j - V * (m + lse)
    smooth = -(epsilon / vocab) * (sum_x - vocab * mpl)
    row_loss = smooth - (1.0 - epsilon) * tgt_logp                       # (1, TT)

    part = jnp.sum(jnp.where(valid, row_loss, 0.0), axis=1, keepdims=True)   # (1, 1)
    lp_ref[...] = part.reshape(1, 1, 1, 1)


def _vmem_capacity_bytes():
    try:
        cap = getattr(pltpu.get_tpu_info(), "vmem_capacity_bytes", None)
        if cap:
            return int(cap)
    except Exception:
        pass
    return 64 << 20        # conservative fallback: v7x per-TensorCore VMEM


def _pick_tile_t(T, V, itemsize, vmem_cap):
    """Token-axis (lane) tile.

    Full T when T <= 128 (always a legal block); otherwise the largest multiple of 128
    whose double-buffered (V, tile_t) logits block (+ target block) stays within ~60% of
    physical VMEM.  Big tiles amortize the ~0.35us per-grid-step overhead and give long
    strided DMA rows (tile_t * itemsize bytes per row)."""
    if T <= 128:
        return T
    T_pad = pl.cdiv(T, 128) * 128
    budget = int(vmem_cap * 0.6)
    per_col = 2 * (V * itemsize + 4)       # logits + int32 targets, x2 pipeline buffers
    t = budget // per_col
    t = max(128, (t // 128) * 128)         # lane-dense multiple of 128 (128 is the floor)
    return int(min(t, T_pad))


def label_smoothing_loss(logits, target, *, ignore_index, epsilon=0.1, tile_t=None):
    """logits: (B, V, T) float (native dtype); target: (B, T) int. Returns scalar f32 loss."""
    B, V, T = logits.shape
    assert target.shape == (B, T)

    itemsize = jnp.dtype(logits.dtype).itemsize
    vmem_cap = _vmem_capacity_bytes()
    if tile_t is None:
        tile_t = _pick_tile_t(T, V, itemsize, vmem_cap)
    grid_t = pl.cdiv(T, tile_t)

    # targets are tiny; reshape so the block's last-two dims satisfy TPU tiling rules
    t3 = target.astype(jnp.int32).reshape(B, 1, T)

    use_mxu_sum = jnp.dtype(logits.dtype) == jnp.dtype(jnp.bfloat16)

    kernel = functools.partial(
        _ls_loss_kernel, epsilon=float(epsilon), ignore_idx=int(ignore_index),
        seq_len=T, vocab=V, use_mxu_sum=bool(use_mxu_sum))

    # VMEM budget from actual buffer math: double-buffered input blocks + slack for
    # outputs / constants / compiler-internal scratch; clamp to ~0.9x physical VMEM.
    block_bytes = V * tile_t * itemsize
    vmem_limit = 2 * (block_bytes + tile_t * 4) + (8 << 20)
    vmem_limit = int(min(max(vmem_limit, 32 << 20), int(vmem_cap * 0.9)))

    # per-(batch, token-tile) partial loss sums; both grid axes "parallel" so a dual-TC
    # chip (v7x) can split the whole grid.  Cross-tile reduction happens in the wrapper.
    lp = pl.pallas_call(
        kernel,
        out_shape=jax.ShapeDtypeStruct((B, grid_t, 1, 1), jnp.float32),
        grid_spec=pltpu.PrefetchScalarGridSpec(
            num_scalar_prefetch=0,
            grid=(B, grid_t),
            in_specs=[
                pl.BlockSpec((1, V, tile_t), lambda b, j: (b, 0, j)),
                pl.BlockSpec((1, 1, tile_t), lambda b, j: (b, 0, j)),
            ],
            out_specs=pl.BlockSpec((1, 1, 1, 1), lambda b, j: (b, j, 0, 0)),
        ),
        compiler_params=pltpu.CompilerParams(
            dimension_semantics=("parallel", "parallel"),
            vmem_limit_bytes=vmem_limit),
    )(logits, t3)

    # denominator computed wrapper-side (trivial XLA reduce over (B, T)); if every
    # target is ignore_index this is 0/0 -> NaN, matching the PyTorch behavior.
    cnt = jnp.sum((target != ignore_index).astype(jnp.float32))
    return jnp.sum(lp) / cnt


def _reference(logits, target, ignore_index, epsilon=0.1):
    # pure-JAX reference mirroring the PyTorch forward
    x = jnp.transpose(logits, (0, 2, 1)).astype(jnp.float32)   # (B, T, V)
    logp = jax.nn.log_softmax(x, axis=2)
    V = x.shape[2]
    tp = jnp.full_like(logp, epsilon / V)
    onehot = (jax.lax.broadcasted_iota(jnp.int32, logp.shape, 2)
              == target[..., None])
    tp = jnp.where(onehot, 1.0 - epsilon + epsilon / V, tp)
    loss = jnp.sum(-tp * logp, axis=2)
    mask = (target != ignore_index).astype(jnp.float32)
    return jnp.sum(loss * mask) / jnp.sum(mask)


if __name__ == "__main__":
    key = jax.random.PRNGKey(0)
    B, V, T = 2, 32, 8
    ignore_index = 0

    k1, k2 = jax.random.split(key)
    logits = jax.random.normal(k1, (B, V, T), dtype=jnp.float32)
    target = jax.random.randint(k2, (B, T), 0, V, dtype=jnp.int32)

    # f32 path (VALU sum_x)
    loss = label_smoothing_loss(logits, target, ignore_index=ignore_index, epsilon=0.1)
    loss = jax.block_until_ready(loss)
    ref = _reference(logits, target, ignore_index, epsilon=0.1)
    assert jnp.allclose(loss, ref, atol=1e-4, rtol=1e-4), (loss, ref)

    # bf16 path (MXU sum_x offload)
    logits_bf = logits.astype(jnp.bfloat16)
    loss_bf = label_smoothing_loss(logits_bf, target, ignore_index=ignore_index, epsilon=0.1)
    loss_bf = jax.block_until_ready(loss_bf)
    ref_bf = _reference(logits_bf, target, ignore_index, epsilon=0.1)
    assert jnp.allclose(loss_bf, ref_bf, atol=5e-3, rtol=5e-3), (loss_bf, ref_bf)

    print("KERNEL_OK")
</pallas_src>

<mosaic_0001>
module attributes {stable_mosaic.version = 11 : i64} {
  func.func @_ls_loss_kernel(%arg0: i32, %arg1: i32, %arg2: memref<1x32x8xf32, #tpu.memory_space<vmem>>, %arg3: memref<1x1x8xi32, #tpu.memory_space<vmem>>, %arg4: memref<1x1x1x1xf32, #tpu.memory_space<vmem>>) attributes {dimension_semantics = [#tpu.dimension_semantics<parallel>, #tpu.dimension_semantics<parallel>], iteration_bounds = array<i64: 2, 1>, scalar_prefetch = 0 : i64, scratch_operands = 0 : i64, tpu.core_type = #tpu.core_type<tc>, window_params = [{transform_indices = @transform_0, window_bounds = array<i64: 1, 32, 8>}, {transform_indices = @transform_1, window_bounds = array<i64: 1, 1, 8>}, {transform_indices = @transform_2, window_bounds = array<i64: 1, 1, 1, 1>}]} {
    %c0 = arith.constant 0 : index
    %c0_0 = arith.constant 0 : index
    %c0_1 = arith.constant 0 : index
    %0 = vector.load %arg2[%c0, %c0_0, %c0_1] : memref<1x32x8xf32, #tpu.memory_space<vmem>>, vector<1x32x8xf32>
    %1 = vector.shape_cast %0 : vector<1x32x8xf32> to vector<32x8xf32>
    %c0_2 = arith.constant 0 : index
    %c0_3 = arith.constant 0 : index
    %c0_4 = arith.constant 0 : index
    %2 = vector.load %arg3[%c0_2, %c0_3, %c0_4] : memref<1x1x8xi32, #tpu.memory_space<vmem>>, vector<1x1x8xi32>
    %3 = vector.shape_cast %2 : vector<1x1x8xi32> to vector<1x8xi32>
    %c8_i32 = arith.constant 8 : i32
    %4 = arith.muli %arg1, %c8_i32 : i32
    %5 = tpu.iota {dimensions = array<i32: 1>} : vector<1x8xi32>
    %6 = vector.broadcast %4 : i32 to vector<1x8xi32>
    %7 = arith.addi %6, %5 : vector<1x8xi32>
    %c8_i32_5 = arith.constant 8 : i32
    %8 = vector.broadcast %c8_i32_5 : i32 to vector<1x8xi32>
    %9 = arith.cmpi slt, %7, %8 : vector<1x8xi32>
    %c0_i32 = arith.constant 0 : i32
    %10 = vector.broadcast %c0_i32 : i32 to vector<1x8xi32>
    %11 = arith.cmpi ne, %3, %10 : vector<1x8xi32>
    %12 = arith.andi %9, %11 : vector<1x8xi1>
    %cst = arith.constant dense<0xFF800000> : vector<8xf32>
    %13 = vector.multi_reduction <maximumf>, %1, %cst [0] : vector<32x8xf32> to vector<8xf32>
    %14 = vector.shape_cast %13 : vector<8xf32> to vector<1x8xf32>
    %15 = vector.broadcast %14 : vector<1x8xf32> to vector<32x8xf32>
    %16 = arith.subf %1, %15 : vector<32x8xf32>
    %17 = math.exp %16 : vector<32x8xf32>
    %cst_6 = arith.constant dense<0.000000e+00> : vector<8xf32>
    %18 = vector.multi_reduction <add>, %17, %cst_6 [0] : vector<32x8xf32> to vector<8xf32>
    %19 = vector.shape_cast %18 : vector<8xf32> to vector<1x8xf32>
    %20 = math.log %19 : vector<1x8xf32>
    %21 = arith.addf %14, %20 : vector<1x8xf32>
    %cst_7 = arith.constant dense<0.000000e+00> : vector<8xf32>
    %22 = vector.multi_reduction <add>, %1, %cst_7 [0] : vector<32x8xf32> to vector<8xf32>
    %23 = vector.shape_cast %22 : vector<8xf32> to vector<1x8xf32>
    %24 = tpu.iota {dimensions = array<i32: 0>} : vector<32x8xi32>
    %25 = vector.broadcast %3 : vector<1x8xi32> to vector<32x8xi32>
    %26 = arith.cmpi eq, %24, %25 : vector<32x8xi32>
    %cst_8 = arith.constant 0.000000e+00 : f32
    %27 = vector.broadcast %cst_8 : f32 to vector<32x8xf32>
    %28 = arith.select %26, %1, %27 : vector<32x8xi1>, vector<32x8xf32>
    %cst_9 = arith.constant dense<0.000000e+00> : vector<8xf32>
    %29 = vector.multi_reduction <add>, %28, %cst_9 [0] : vector<32x8xf32> to vector<8xf32>
    %30 = vector.shape_cast %29 : vector<8xf32> to vector<1x8xf32>
    %c0_i32_10 = arith.constant 0 : i32
    %31 = vector.broadcast %c0_i32_10 : i32 to vector<1x8xi32>
    %32 = arith.cmpi sge, %3, %31 : vector<1x8xi32>
    %c32_i32 = arith.constant 32 : i32
    %33 = vector.broadcast %c32_i32 : i32 to vector<1x8xi32>
    %34 = arith.cmpi slt, %3, %33 : vector<1x8xi32>
    %35 = arith.andi %32, %34 : vector<1x8xi1>
    %36 = arith.subf %30, %21 : vector<1x8xf32>
    %cst_11 = arith.constant 0.000000e+00 : f32
    %37 = vector.broadcast %cst_11 : f32 to vector<1x8xf32>
    %38 = arith.select %35, %36, %37 : vector<1x8xi1>, vector<1x8xf32>
    %cst_12 = arith.constant 3.200000e+01 : f32
    %39 = vector.broadcast %cst_12 : f32 to vector<1x8xf32>
    %40 = arith.mulf %39, %21 : vector<1x8xf32>
    %41 = arith.subf %23, %40 : vector<1x8xf32>
    %cst_13 = arith.constant -3.125000e-03 : f32
    %42 = vector.broadcast %cst_13 : f32 to vector<1x8xf32>
    %43 = arith.mulf %42, %41 : vector<1x8xf32>
    %cst_14 = arith.constant 0.899999976 : f32
    %44 = vector.broadcast %cst_14 : f32 to vector<1x8xf32>
    %45 = arith.mulf %44, %38 : vector<1x8xf32>
    %46 = arith.subf %43, %45 : vector<1x8xf32>
    %cst_15 = arith.constant 0.000000e+00 : f32
    %47 = vector.broadcast %cst_15 : f32 to vector<1x8xf32>
    %48 = arith.select %12, %46, %47 : vector<1x8xi1>, vector<1x8xf32>
    %cst_16 = arith.constant dense<0.000000e+00> : vector<1xf32>
    %49 = vector.multi_reduction <add>, %48, %cst_16 [1] : vector<1x8xf32> to vector<1xf32>
    %50 = vector.shape_cast %49 : vector<1xf32> to vector<1x1xf32>
    %51 = vector.shape_cast %50 : vector<1x1xf32> to vector<1x1x1x1xf32>
    %c0_17 = arith.constant 0 : index
    %c0_18 = arith.constant 0 : index
    %c0_19 = arith.constant 0 : index
    %c0_20 = arith.constant 0 : index
    %52 = vector.load %arg4[%c0_17, %c0_18, %c0_19, %c0_20] : memref<1x1x1x1xf32, #tpu.memory_space<vmem>>, vector<1x1x1x1xf32>
    tpu.vector_store %arg4[%c0_17, %c0_18, %c0_19, %c0_20], %51 {strides = array<i32>} : memref<1x1x1x1xf32, #tpu.memory_space<vmem>>, vector<1x1x1x1xf32>,
    return
  }
  func.func @transform_0(%arg0: i32, %arg1: i32) -> (i32, i32, i32) {
    %c0_i32 = arith.constant 0 : i32
    %c0_i32_0 = arith.constant 0 : i32
    return %arg0, %c0_i32, %arg1 : i32, i32, i32
  }
  func.func @transform_1(%arg0: i32, %arg1: i32) -> (i32, i32, i32) {
    %c0_i32 = arith.constant 0 : i32
    %c0_i32_0 = arith.constant 0 : i32
    return %arg0, %c0_i32, %arg1 : i32, i32, i32
  }
  func.func @transform_2(%arg0: i32, %arg1: i32) -> (i32, i32, i32, i32) {
    %c0_i32 = arith.constant 0 : i32
    %c0_i32_0 = arith.constant 0 : i32
    %c0_i32_1 = arith.constant 0 : i32
    return %arg0, %arg1, %c0_i32, %c0_i32_0 : i32, i32, i32, i32
  }
}

</mosaic_0001>

<bundles_post_ra>
// kernel: tpu_custom_call.1
= control target key start
LH: loop header
LB: loop body
LE: loop exit
PB: predicated region body
PF: predicated region fallthrough
CT: control target
= control target key end

     0   :  { %s477_s9 = smov 0   ;;  %s479_s10 = smov 0   ;;  %s555_s0 = inlined_call_operand.vmem [shape: f32[2,32,8], index: 0, kind: input, shape index: {}]   ;;  %s556_s1 = inlined_call_operand.vmem [shape: s32[2,1,8], index: 1, kind: input, shape index: {}]   ;;  %s557_s2 = inlined_call_operand.vmem [shape: f32[2,1,1,1], index: 2, kind: output, shape index: {}]  }
   0x1   :  { %s481_s11 = smov 0  }
   0x2 LB: > { %s24_s12 = sadd.s32 1, %s456_s10  ;;  %p398_p0 = scmp.ge.s32.totalorder %s460_s11, 1  ;;  %s460_s11 = sphi %s481_s11, %s12_s11   ;;  %s456_s10 = sphi %s479_s10, %s559_s10   ;;  %s452_s9 = sphi %s477_s9, %s558_s9  }
   0x3   : > { %p26_p1 = scmp.ge.s32.totalorder %s24_s12, 2  ;;  %p144_p2 = scmp.lt.s32.totalorder %s460_s11, 3 }
   0x5   : > { %s561_s12 = smov (%p26_p1, %s24_s12), 0  ;;  %p145_p3 = pnand %p398_p0, %p144_p2 }
   0x6   : > { %p176_p4 = scmp.lt.s32.totalorder (!%p145_p3), %s452_s9, 1  ;;  %vm209_vm0 = vcmask (!%p145_p3), 64512   ;;  %v202_v12 = vlaneseq (!%p145_p3)  ;;  %vm305_vm11 = vcmask (!%p145_p3), 57344   ;;  %vm309_vm12 = vcmask (!%p145_p3), 0  }
   0x7   : > { %148 = sbr.rel (%p145_p3) target bundleno = 239 (0xef), region = 28 }
   0x8   : > { %v265_v15 = vshrl.u32 (!%p145_p3), %v202_v12, 7 }
   0xa   : > { %v271_v18 = vsub.s32 (!%p145_p3), 0, %v265_v15  ;;  %v266_v25 = vadd.s32 (!%p145_p3), 8, %v265_v15  ;;  %v267_v31 = vadd.s32 (!%p145_p3), 16, %v265_v15  ;;  %v268_v34 = vadd.s32 (!%p145_p3), 24, %v265_v15 }
   0xe   : > { %s563_s9 = smov (!%p176_p4, %s452_s9), 1 }
   0xf   : > { %s403_s13 = sshll.u32 %s563_s9, 5  ;;  %s189_s19 = scalar_lea.vmem %s556_s1, %s563_s9 }
  0x10   : > { %s183_s16 = scalar_lea.vmem %s555_s0, %s403_s13  ;;  %v513_v19 = vld [vmem:[%s189_s19] sm:$0x1]  ;;  %s195_s22 = scalar_lea.vmem %s557_s2, %s563_s9 }
  0x11   : > { %v196_v0 = vld [vmem:[%s183_s16] sm:$0xff]  ;;  %v197_v1 = vld [vmem:[%s183_s16 + $0x8] sm:$0xff]  ;;  %v198_v2 = vld [vmem:[%s183_s16 + $0x10] sm:$0xff]  ;;  %v272_v26 = vrot.slane %v513_v19, %v271_v18  ;;  %vm294_vm5 = vcmp.ge.s32.totalorder %v513_v19, 0  ;;  %vm295_vm6 = vcmp.lt.s32.totalorder %v513_v19, 32  ;;  %v203_v18 = vand.u32 127, %v202_v12 }
  0x12   : > { %v501_v3 = vld [vmem:[%s183_s16 + $0x18] sm:$0xff]  ;;  %v210_v4 = vsel %vm209_vm0, %v196_v0, -inf  ;;  %v211_v5 = vsel %vm209_vm0, %v197_v1, -inf  ;;  %v212_v6 = vsel %vm209_vm0, %v198_v2, -inf  ;;  %v251_v38 = vsel %vm209_vm0, %v196_v0, 0.0  ;;  %vm296_vm7 = vmand %vm294_vm5, %vm295_vm6 }
  0x13   : > { %v213_v7 = vsel %vm209_vm0, %v501_v3, -inf  ;;  %v214_v8 = vmax.f32 %v210_v4, %v211_v5  ;;  %vm273_vm1 = vcmp.eq.s32.totalorder %v265_v15, %v272_v26  ;;  %vm274_vm2 = vcmp.eq.s32.totalorder %v266_v25, %v272_v26 }
  0x14   : > { %v215_v9 = vmax.f32 %v212_v6, %v213_v7  ;;  %v277_v32 = vsel %vm273_vm1, %v196_v0, 0.0  ;;  %v278_v33 = vsel %vm274_vm2, %v197_v1, 0.0  ;;  %vm275_vm3 = vcmp.eq.s32.totalorder %v267_v31, %v272_v26 }
  0x15   : > { %v281_v35 = vsel %vm209_vm0, %v277_v32, 0.0  ;;  %v282_v36 = vsel %vm209_vm0, %v278_v33, 0.0  ;;  %v279_v37 = vsel %vm275_vm3, %v198_v2, 0.0  ;;  %v252_v39 = vsel %vm209_vm0, %v197_v1, 0.0 }
  0x16   : > { %v216_v10 = vmax.f32 %v214_v8, %v215_v9  ;;  %vm276_vm4 = vcmp.eq.s32.totalorder %v268_v34, %v272_v26  ;;  %v283_v41 = vadd.f32 %v282_v36, %v281_v35  ;;  %v284_v44 = vsel %vm209_vm0, %v279_v37, 0.0 }
  0x17   : > { %v253_v47 = vadd.f32 %v252_v39, %v251_v38  ;;  %v280_v48 = vsel %vm276_vm4, %v501_v3, 0.0  ;;  %v254_v52 = vsel %vm209_vm0, %v198_v2, 0.0  ;;  %v256_v59 = vsel %vm209_vm0, %v501_v3, 0.0 }
  0x18   : > { %v217_v11 = vrot.slane %v216_v10, 4  ;;  %v285_v54 = vadd.f32 %v284_v44, %v283_v41  ;;  %v286_v56 = vsel %vm209_vm0, %v280_v48, 0.0  ;;  %vm206_vm8 = vcmp.lt.s32.totalorder %v203_v18, 8 }
  0x19   : > { %v255_v57 = vadd.f32 %v254_v52, %v253_v47  ;;  %vm207_vm9 = vcmp.ne.s32.totalorder %v513_v19, 0 }
  0x1a   : > { %v218_v13 = vmax.f32 %v216_v10, %v217_v11  ;;  %v287_v60 = vadd.f32 %v286_v56, %v285_v54  ;;  %vm208_vm10 = vmand %vm206_vm8, %vm207_vm9 }
  0x1b   : > { %v257_v62 = vadd.f32 %v256_v59, %v255_v57 }
  0x1c   : > { %v219_v14 = vrot.slane %v218_v13, 2 }
  0x1d   : > { %v258_v4 = vrot.slane %v257_v62, 4 }
  0x1e   : > { %v220_v16 = vmax.f32 %v218_v13, %v219_v14 }
  0x1f   : > { %v259_v7 = vadd.f32 %v258_v4, %v257_v62 }
  0x20   : > { %v221_v17 = vrot.slane %v220_v16, 1 }
  0x21   : > { %v260_v10 = vrot.slane %v259_v7, 2 }
  0x22   : > { %v515_v20 = vmax.f32 %v220_v16, %v221_v17 }
  0x23   : > { %v261_v13 = vadd.f32 %v260_v10, %v259_v7 }
  0x24   : > { %v223_v21 = vsub.f32 %v196_v0, %v515_v20  ;;  %v224_v22 = vsub.f32 %v197_v1, %v515_v20  ;;  %v225_v23 = vsub.f32 %v198_v2, %v515_v20  ;;  %v226_v24 = vsub.f32 %v501_v3, %v515_v20 }
  0x25   : > { %v288_v0 = vrot.slane %v287_v60, 4  ;;  %v262_v15 = vrot.slane %v261_v13, 1 }
  0x26   : > { %v227_v27 = vmul.f32 1.442695, %v223_v21  ;;  %v229_v28 = vmul.f32 1.442695, %v224_v22  ;;  %v231_v29 = vmul.f32 1.442695, %v225_v23 }
  0x27   : > { %v233_v30 = vmul.f32 1.442695, %v226_v24  ;;  %v289_v2 = vadd.f32 %v288_v0, %v287_v60  ;;  %v263_v22 = vadd.f32 %v262_v15, %v261_v13 }
  0x28   : > { %428 = vpow2.f32 %v227_v27 }
  0x29   : > { %430 = vpow2.f32 %v229_v28  ;;  %v290_v9 = vrot.slane %v289_v2, 2 }
  0x2a   : > { %432 = vpow2.f32 %v231_v29 }
  0x2b   : > { %434 = vpow2.f32 %v233_v30  ;;  %v291_v11 = vadd.f32 %v290_v9, %v289_v2 }
  0x2d   : > { %v292_v14 = vrot.slane %v291_v11, 1 }
  0x2f   : > { %v293_v17 = vadd.f32 %v292_v14, %v291_v11 }
  0x32   : > { %v429_v40 = vpop.eup %428 }
  0x33   : > { %v431_v42 = vpop.eup %430  ;;  %v235_v43 = vsel %vm209_vm0, %v429_v40, 0.0 }
  0x34   : > { %v433_v45 = vpop.eup %432  ;;  %v236_v46 = vsel %vm209_vm0, %v431_v42, 0.0 }
  0x35   : > { %v435_v49 = vpop.eup %434  ;;  %v237_v50 = vadd.f32 %v236_v46, %v235_v43  ;;  %v238_v51 = vsel %vm209_vm0, %v433_v45, 0.0 }
  0x36   : > { %v240_v53 = vsel %vm209_vm0, %v435_v49, 0.0 }
  0x37   : > { %v239_v55 = vadd.f32 %v238_v51, %v237_v50 }
  0x39   : > { %v241_v58 = vadd.f32 %v240_v53, %v239_v55 }
  0x3b   : > { %v242_v61 = vrot.slane %v241_v58, 4 }
  0x3d   : > { %v243_v63 = vadd.f32 %v242_v61, %v241_v58 }
  0x3f   : > { %v244_v1 = vrot.slane %v243_v63, 2 }
  0x41   : > { %v245_v5 = vadd.f32 %v244_v1, %v243_v63 }
  0x43   : > { %v246_v6 = vrot.slane %v245_v5, 1 }
  0x45   : > { %v247_v8 = vadd.f32 %v246_v6, %v245_v5 }
  0x47   : > { %436 = vlog2.f32 %v247_v8 }
  0x51   : > { %v437_v3 = vpop.eup %436 }
  0x52   : > { %v249_v16 = vmul.f32 0.6931472, %v437_v3 }
  0x54   : > { %v250_v21 = vadd.f32 %v249_v16, %v515_v20 }
  0x56   : > { %v297_v23 = vsub.f32 %v293_v17, %v250_v21  ;;  %v299_v24 = vmul.f32 32.0, %v250_v21 }
  0x58   : > { %v298_v25 = vsel %vm296_vm7, %v297_v23, 0.0  ;;  %v300_v26 = vsub.f32 %v263_v22, %v299_v24 }
  0x59   : > { %v302_v27 = vmul.f32 0.9, %v298_v25 }
  0x5a   : > { %v301_v28 = vmul.f32 -0.003125, %v300_v26 }
  0x5c   : > { %v303_v29 = vsub.f32 %v301_v28, %v302_v27 }
  0x5e   : > { %v304_v30 = vsel %vm208_vm10, %v303_v29, 0.0 }
  0x5f   : > { %v306_v31 = vsel %vm305_vm11, %v304_v30, 0.0 }
  0x60   : > { %307 = vadd.xlane.f32.xlu0 %v306_v31 }
  0xed   : > { %v308_v12 = vpop.xlane.xlu0 %307 }
  0xee   : > { %310 = vst.msk [vmem:[%s195_s22] sm:$0x1] %vm309_vm12, %v308_v12 }
  0xef PF: > { %s12_s11 = sadd.s32 1, %s460_s11   ;;  %s558_s9 = smov %s456_s10 }
  0xf0   : > { %p9_p5 = scmp.ge.s32.totalorder %s12_s11, 4   ;;  %s559_s10 = smov %s561_s12 }
  0xf2   :  { %11 = sbr.rel (!%p9_p5) target bundleno = 2 (0x2), region = 61 }

</bundles_post_ra>
